<compile_context>
chip_gen: v7x
topology: tpu7x:2x2x1
jax: 0.10.0
libtpu: 0.0.40
codegen_flags: <defaults>
</compile_context>

<pallas_src>
import math
import numpy as np
import jax
import jax.numpy as jnp
from jax.experimental import pallas as pl
from jax.experimental.pallas import tpu as pltpu


# ----------------------------------------------------------------------------
# host-side helpers (deterministic glue, plain numpy)
# ----------------------------------------------------------------------------
def _round_up(x, m):
    return -(-x // m) * m


def _hamming_periodic(n):
    i = np.arange(n, dtype=np.float64)
    return 0.54 - 0.46 * np.cos(2.0 * np.pi * i / n)


def _hann_periodic(n):
    i = np.arange(n, dtype=np.float64)
    return 0.5 - 0.5 * np.cos(2.0 * np.pi * i / n)


def _make_fused_bases(n_fft, window, f_pad):
    """Fused forward / inverse one-sided DFT bases, windows folded in, F padded.

    W_fwd : (n_fft, 2*f_pad)   frames_raw @ W_fwd = [Re X | Im X]
    W_inv : (2*f_pad, n_fft)   [Rr | Ri] @ W_inv  = windowed inverse DFT frame
    Zero-padding the frequency axis to a multiple of 128 is exact (padded
    forward columns and padded inverse rows are zero).
    """
    F = n_fft // 2 + 1
    n = np.arange(n_fft, dtype=np.float64)[:, None]
    k = np.arange(F, dtype=np.float64)[None, :]
    ang = 2.0 * np.pi * n * k / n_fft
    cos = np.cos(ang)                                # (n_fft, F)
    sin = np.sin(ang)
    wcos = window[:, None] * cos                     # Re X = (x*w) @ cos
    wsin = window[:, None] * (-sin)                  # Im X = (x*w) @ (-sin)
    c = np.full((F,), 2.0)                           # conjugate-symmetry weights
    c[0] = 1.0
    if n_fft % 2 == 0:
        c[-1] = 1.0
    icos = ((c[:, None] * cos.T) / n_fft) * window[None, :]    # (F, n_fft)
    isin = ((c[:, None] * (-sin.T)) / n_fft) * window[None, :]
    w_fwd = np.zeros((n_fft, 2 * f_pad), np.float32)
    w_fwd[:, :F] = wcos
    w_fwd[:, f_pad:f_pad + F] = wsin
    w_inv = np.zeros((2 * f_pad, n_fft), np.float32)
    w_inv[:F, :] = icos
    w_inv[f_pad:f_pad + F, :] = isin
    return w_fwd, w_inv


# ----------------------------------------------------------------------------
# Pallas kernels
# ----------------------------------------------------------------------------
def _make_mask2wave_kernel(tT, hop, r, f_pad):
    """Fused STFT -> mask -> ISTFT -> overlap-add for one (batch, frame-tile)."""
    n_fft = r * hop

    def kernel(wmain_ref, wnext_ref, mask_ref, ienv_ref, wfwd_ref, winv_ref,
               out_ref, carry_ref):
        j = pl.program_id(1)
        f32 = jnp.float32

        # ---- framing: (tT, n_fft) raw frames from compact hop-chunks ----------
        # chunk rows [j*tT, j*tT + tT + r - 1); the last r-1 rows come from the
        # look-ahead block (first chunks of the next tile).
        wmain = wmain_ref[0]                                          # (tT, hop)
        if r > 1:
            win_rows = jnp.concatenate(
                [wmain, wnext_ref[0][:r - 1, :]], axis=0)             # (tT+r-1, hop)
        else:
            win_rows = wmain
        frames = jnp.concatenate(
            [win_rows[s:s + tT, :] for s in range(r)], axis=1)        # (tT, n_fft)

        # ---- fused forward DFT -> mask -> inverse DFT (two MXU passes) --------
        x = jnp.dot(frames, wfwd_ref[...],
                    preferred_element_type=f32)                       # (tT, 2*f_pad)
        m = mask_ref[0]                                               # (tT, f_pad)
        # (mask*|X|)*exp(i*angle(X)) == mask*X  -> multiply Re/Im by the mask.
        rm = x * jnp.concatenate([m, m], axis=1)
        rec = jnp.dot(rm, winv_ref[...],
                      preferred_element_type=f32)                     # (tT, n_fft)

        # ---- in-tile overlap-add: rows[t+s, :] += rec[t, s*hop:(s+1)*hop] ------
        ola = None
        for s in range(r):
            piece = rec[:, s * hop:(s + 1) * hop]                     # (tT, hop)
            parts = []
            if s > 0:
                parts.append(jnp.zeros((s, hop), f32))
            parts.append(piece)
            if r - 1 - s > 0:
                parts.append(jnp.zeros((r - 1 - s, hop), f32))
            shifted = jnp.concatenate(parts, axis=0) if len(parts) > 1 else piece
            ola = shifted if ola is None else ola + shifted           # (tT+r-1, hop)

        # ---- cross-tile carry of the (r-1)*hop overlap samples -----------------
        if r > 1:
            @pl.when(j == 0)
            def _():
                carry_ref[...] = jnp.zeros_like(carry_ref)
            carry_head = jnp.concatenate(
                [carry_ref[...], jnp.zeros((tT - (r - 1), hop), f32)], axis=0)
            head = ola[:tT, :] + carry_head                           # (tT, hop)
            carry_ref[...] = ola[tT:, :]          # spills into the next tile
        else:
            head = ola

        # window^2 OLA normalization folded in as a precomputed reciprocal.
        out_ref[0] = head * ienv_ref[...]

    return kernel


def _finalize_kernel(w_ref, out_ref):
    """Scale to int16 range and apply the per-row clip of the torch 2-D branch."""
    w = w_ref[...] * (2.0 ** 15)
    vmax = jnp.max(jnp.abs(w), axis=1, keepdims=True)
    vclip = jnp.where(vmax > 2.0 ** 15, jnp.full_like(vmax, 2.0 ** 14), vmax)
    # NOTE: like the torch reference, an all-zero row divides by zero and a row
    #       whose max is exactly 2**15 may wrap on the later int16 cast.
    out_ref[...] = w * (vclip / vmax)


def _finalize_rescale_kernel(w_ref, c_ref, out_ref):
    """rescale=True variant: per-row least-squares gain against the clean wave."""
    w = w_ref[...] * (2.0 ** 15)
    c = c_ref[...]
    scale = (jnp.sum(c * w, axis=1, keepdims=True)
             / jnp.sum(w * w, axis=1, keepdims=True))
    w = scale * w
    vmax = jnp.max(jnp.abs(w), axis=1, keepdims=True)
    vclip = jnp.where(vmax > 2.0 ** 15, jnp.full_like(vmax, 2.0 ** 14), vmax)
    out_ref[...] = w * (vclip / vmax)


# ----------------------------------------------------------------------------
# module wrapper
# ----------------------------------------------------------------------------
class ReconstructMask2Wave:
    def __init__(self, n_fft, hop_length, win_type='hamming',
                 win_length=None, rescale=False):
        assert win_type in ('hamming', 'hann', 'hanning')
        # TODO(synk): only hop_length dividing n_fft is supported by the fused
        #             overlap-add kernel (the standard STFT configuration).
        assert n_fft % hop_length == 0, "n_fft must be a multiple of hop_length"
        self.n_fft = n_fft
        self.hop = hop_length
        self.r = n_fft // hop_length
        self.rescale = rescale
        self.F = n_fft // 2 + 1
        self.F_pad = _round_up(self.F, 128)

        win_length = win_length or n_fft
        win = _hamming_periodic(win_length) if win_type == 'hamming' else _hann_periodic(win_length)
        if win_length < n_fft:                       # center-pad window to n_fft
            pad = n_fft - win_length
            win = np.pad(win, (pad // 2, pad - pad // 2))
        self.window = win.astype(np.float64)

        w_fwd, w_inv = _make_fused_bases(n_fft, self.window, self.F_pad)
        self.w_fwd = jnp.asarray(w_fwd)              # (n_fft, 2*F_pad)
        self.w_inv = jnp.asarray(w_inv)              # (2*F_pad, n_fft)

    # ---- tiling / envelope helpers -----------------------------------------
    def _choose_frame_tile(self, T):
        hop, n_fft, f_pad, r = self.hop, self.n_fft, self.F_pad, self.r
        q = 128 // math.gcd(hop, 128)                # tT*hop % 128 == 0
        step = (8 * q) // math.gcd(8, q)             # lcm(8, q): sublane + lane aligned
        t_need = T + r - 1
        t_min = max(step, _round_up(r, step))        # carry logic needs tT >= r
        tT = max(t_min, _round_up(min(256, t_need), step))
        # rough VMEM budget so realistic configs stay well inside the scoped limit
        base_bytes = 2 * (n_fft * 2 * f_pad * 4) * 2         # both bases, 2 buffers
        per_frame = 4 * (2 * n_fft + 8 * f_pad + 6 * hop)    # per-frame working set
        budget = 24 * 1024 * 1024
        while tT > t_min and base_bytes + tT * per_frame > budget:
            tT -= step
        return tT

    def _inv_ola_envelope(self, T, T_pad):
        """Precompute 1 / sum_t window^2 (zero beyond the real ISTFT length)."""
        hop, n_fft = self.hop, self.n_fft
        L_out = (T - 1) * hop + n_fft
        w2 = self.window ** 2
        env = np.zeros(T_pad * hop, dtype=np.float64)
        for t in range(T):
            env[t * hop:t * hop + n_fft] += w2
        inv = np.zeros(T_pad * hop, dtype=np.float64)
        inv[:L_out] = 1.0 / np.maximum(env[:L_out], 1e-11)
        return jnp.asarray(inv.reshape(T_pad, hop).astype(np.float32))

    # ---- forward -------------------------------------------------------------
    def __call__(self, predict_mask, mixture_wave, clean_wave=None):
        # TODO(synk): only the batched (B, L) waveform branch of the reference is
        #             implemented (the 1-D branch differs only in the final clip).
        n_fft, hop, r = self.n_fft, self.hop, self.r
        F, F_pad = self.F, self.F_pad

        wave = jnp.asarray(mixture_wave).astype(jnp.float32) * (1.0 / 2.0 ** 15)
        B, L = wave.shape
        assert L >= n_fft
        T = (L - n_fft) // hop + 1
        mask = jnp.asarray(predict_mask).astype(jnp.float32)           # (B, T, F)

        tT = self._choose_frame_tile(T)
        n_tiles = -(-(T + r - 1) // tT)      # padded frames guarantee the OLA tail
        T_pad = n_tiles * tT                 # lands inside a written output block

        # compact hop-chunked wave; one extra tile of zeros so the look-ahead
        # block (first r-1 chunks of the next tile) is always in range.
        n_chunks = (n_tiles + 1) * tT
        wave3d = jnp.pad(wave, ((0, 0), (0, n_chunks * hop - L))).reshape(B, n_chunks, hop)

        # zero-padded mask: padded frames / padded freq bins contribute nothing.
        mask_p = jnp.pad(mask, ((0, 0), (0, T_pad - T), (0, F_pad - F)))

        inv_env = self._inv_ola_envelope(T, T_pad)                      # (T_pad, hop)

        kernel = _make_mask2wave_kernel(tT, hop, r, F_pad)
        out3d = pl.pallas_call(
            kernel,
            out_shape=jax.ShapeDtypeStruct((B, T_pad, hop), jnp.float32),
            grid=(B, n_tiles),
            in_specs=[
                pl.BlockSpec((1, tT, hop), lambda b, j: (b, j, 0)),       # wave chunks
                pl.BlockSpec((1, tT, hop), lambda b, j: (b, j + 1, 0)),   # look-ahead
                pl.BlockSpec((1, tT, F_pad), lambda b, j: (b, j, 0)),     # mask
                pl.BlockSpec((tT, hop), lambda b, j: (j, 0)),             # 1 / OLA env
                pl.BlockSpec((n_fft, 2 * F_pad), lambda b, j: (0, 0)),    # fused fwd basis
                pl.BlockSpec((2 * F_pad, n_fft), lambda b, j: (0, 0)),    # fused inv basis
            ],
            out_specs=pl.BlockSpec((1, tT, hop), lambda b, j: (b, j, 0)),
            scratch_shapes=[pltpu.VMEM((max(r - 1, 1), hop), jnp.float32)],
            compiler_params=pltpu.CompilerParams(
                dimension_semantics=("parallel", "arbitrary"),
                vmem_limit_bytes=32 * 1024 * 1024,
            ),
        )(wave3d, wave3d, mask_p, inv_env, self.w_fwd, self.w_inv)

        # (B, T_pad, hop) -> (B, Lp): trailing-dim merge, already lane-dense
        # (tT*hop is a multiple of 128 by construction).
        Lp = T_pad * hop
        rec = out3d.reshape(B, Lp)
        L_fin = Lp
        if L > Lp:
            L_fin = _round_up(L, 128)
            rec = jnp.pad(rec, ((0, 0), (0, L_fin - Lp)))

        fin_common = dict(
            out_shape=jax.ShapeDtypeStruct((B, L_fin), jnp.float32),
            grid=(B,),
            out_specs=pl.BlockSpec((1, L_fin), lambda b: (b, 0)),
            compiler_params=pltpu.CompilerParams(dimension_semantics=("parallel",)),
        )
        if self.rescale:
            clean = jnp.asarray(clean_wave).astype(jnp.float32)
            clean = jnp.pad(clean, ((0, 0), (0, L_fin - clean.shape[-1])))
            scaled = pl.pallas_call(
                _finalize_rescale_kernel,
                in_specs=[pl.BlockSpec((1, L_fin), lambda b: (b, 0)),
                          pl.BlockSpec((1, L_fin), lambda b: (b, 0))],
                **fin_common,
            )(rec, clean)
        else:
            scaled = pl.pallas_call(
                _finalize_kernel,
                in_specs=[pl.BlockSpec((1, L_fin), lambda b: (b, 0))],
                **fin_common,
            )(rec)

        return [scaled[:, :L].astype(jnp.int16)]


# ----------------------------------------------------------------------------
# demo
# ----------------------------------------------------------------------------
if __name__ == "__main__":
    n_fft, hop = 32, 8
    B = 2
    T = 16                                   # frames
    L = (T - 1) * hop + n_fft                # 152 samples
    F = n_fft // 2 + 1                       # 17 bins

    key = jax.random.PRNGKey(0)
    k_mask, k_wave = jax.random.split(key)
    predict_mask = jax.random.uniform(k_mask, (B, T, F), dtype=jnp.float32)
    mixture_wave = jax.random.randint(
        k_wave, (B, L), minval=-20000, maxval=20000, dtype=jnp.int32
    ).astype(jnp.int16)

    module = ReconstructMask2Wave(n_fft=n_fft, hop_length=hop,
                                  win_type='hamming', rescale=False)
    out = module(predict_mask, mixture_wave)[0]
    jax.block_until_ready(out)
    assert out.shape == (B, L) and out.dtype == jnp.int16
    print("KERNEL_OK")
</pallas_src>

<mosaic_0001>
module attributes {stable_mosaic.version = 11 : i64} {
  func.func @kernel(%arg0: i32, %arg1: i32, %arg2: memref<1x32x8xf32, #tpu.memory_space<vmem>>, %arg3: memref<1x32x8xf32, #tpu.memory_space<vmem>>, %arg4: memref<1x32x128xf32, #tpu.memory_space<vmem>>, %arg5: memref<32x8xf32, #tpu.memory_space<vmem>>, %arg6: memref<32x256xf32, #tpu.memory_space<vmem>>, %arg7: memref<256x32xf32, #tpu.memory_space<vmem>>, %arg8: memref<1x32x8xf32, #tpu.memory_space<vmem>>, %arg9: memref<3x8xf32, #tpu.memory_space<vmem>>) attributes {dimension_semantics = [#tpu.dimension_semantics<parallel>, #tpu.dimension_semantics<arbitrary>], iteration_bounds = array<i64: 2, 1>, scalar_prefetch = 0 : i64, scratch_operands = 1 : i64, tpu.core_type = #tpu.core_type<tc>, window_params = [{transform_indices = @transform_0, window_bounds = array<i64: 1, 32, 8>}, {transform_indices = @transform_1, window_bounds = array<i64: 1, 32, 8>}, {transform_indices = @transform_2, window_bounds = array<i64: 1, 32, 128>}, {transform_indices = @transform_3, window_bounds = array<i64: 32, 8>}, {pipeline_mode = #tpu.pipeline_mode<synchronous>, transform_indices = @transform_4, window_bounds = array<i64: 32, 256>}, {pipeline_mode = #tpu.pipeline_mode<synchronous>, transform_indices = @transform_5, window_bounds = array<i64: 256, 32>}, {transform_indices = @transform_6, window_bounds = array<i64: 1, 32, 8>}]} {
    %c0 = arith.constant 0 : index
    %c0_0 = arith.constant 0 : index
    %c0_1 = arith.constant 0 : index
    %0 = vector.load %arg2[%c0, %c0_0, %c0_1] : memref<1x32x8xf32, #tpu.memory_space<vmem>>, vector<1x32x8xf32>
    %1 = vector.shape_cast %0 : vector<1x32x8xf32> to vector<32x8xf32>
    %c0_2 = arith.constant 0 : index
    %c0_3 = arith.constant 0 : index
    %c0_4 = arith.constant 0 : index
    %2 = vector.load %arg3[%c0_2, %c0_3, %c0_4] : memref<1x32x8xf32, #tpu.memory_space<vmem>>, vector<1x32x8xf32>
    %3 = vector.shape_cast %2 : vector<1x32x8xf32> to vector<32x8xf32>
    %4 = vector.extract_strided_slice %3 {offsets = [0, 0], sizes = [3, 8], strides = [1, 1]} : vector<32x8xf32> to vector<3x8xf32>
    %5 = tpu.concatenate %1, %4 in 0 : vector<32x8xf32>, vector<3x8xf32> -> vector<35x8xf32>
    %6 = vector.extract_strided_slice %5 {offsets = [0, 0], sizes = [32, 8], strides = [1, 1]} : vector<35x8xf32> to vector<32x8xf32>
    %7 = vector.extract_strided_slice %5 {offsets = [1, 0], sizes = [32, 8], strides = [1, 1]} : vector<35x8xf32> to vector<32x8xf32>
    %8 = vector.extract_strided_slice %5 {offsets = [2, 0], sizes = [32, 8], strides = [1, 1]} : vector<35x8xf32> to vector<32x8xf32>
    %9 = vector.extract_strided_slice %5 {offsets = [3, 0], sizes = [32, 8], strides = [1, 1]} : vector<35x8xf32> to vector<32x8xf32>
    %10 = tpu.concatenate %6, %7, %8, %9 in 1 : vector<32x8xf32>, vector<32x8xf32>, vector<32x8xf32>, vector<32x8xf32> -> vector<32x32xf32>
    %c0_5 = arith.constant 0 : index
    %c0_6 = arith.constant 0 : index
    %11 = vector.load %arg6[%c0_5, %c0_6] : memref<32x256xf32, #tpu.memory_space<vmem>>, vector<32x256xf32>
    %cst = arith.constant dense<0.000000e+00> : vector<32x256xf32>
    %12 = tpu.matmul %10, %11, %cst {dimension_numbers = #tpu.dot_dimension_numbers<[1], [0], [0], [1], [0, 0, 1, 1], [], []>} : vector<32x32xf32>, vector<32x256xf32>, vector<32x256xf32> -> vector<32x256xf32>
    %c0_7 = arith.constant 0 : index
    %c0_8 = arith.constant 0 : index
    %c0_9 = arith.constant 0 : index
    %13 = vector.load %arg4[%c0_7, %c0_8, %c0_9] : memref<1x32x128xf32, #tpu.memory_space<vmem>>, vector<1x32x128xf32>
    %14 = vector.shape_cast %13 : vector<1x32x128xf32> to vector<32x128xf32>
    %15 = tpu.concatenate %14, %14 in 1 : vector<32x128xf32>, vector<32x128xf32> -> vector<32x256xf32>
    %16 = arith.mulf %12, %15 : vector<32x256xf32>
    %c0_10 = arith.constant 0 : index
    %c0_11 = arith.constant 0 : index
    %17 = vector.load %arg7[%c0_10, %c0_11] : memref<256x32xf32, #tpu.memory_space<vmem>>, vector<256x32xf32>
    %cst_12 = arith.constant dense<0.000000e+00> : vector<32x32xf32>
    %18 = tpu.matmul %16, %17, %cst_12 {dimension_numbers = #tpu.dot_dimension_numbers<[1], [0], [0], [1], [0, 0, 1, 1], [], []>} : vector<32x256xf32>, vector<256x32xf32>, vector<32x32xf32> -> vector<32x32xf32>
    %19 = vector.extract_strided_slice %18 {offsets = [0, 0], sizes = [32, 8], strides = [1, 1]} : vector<32x32xf32> to vector<32x8xf32>
    %cst_13 = arith.constant 0.000000e+00 : f32
    %20 = vector.broadcast %cst_13 : f32 to vector<3x8xf32>
    %21 = tpu.concatenate %19, %20 in 0 : vector<32x8xf32>, vector<3x8xf32> -> vector<35x8xf32>
    %22 = vector.extract_strided_slice %18 {offsets = [0, 8], sizes = [32, 8], strides = [1, 1]} : vector<32x32xf32> to vector<32x8xf32>
    %cst_14 = arith.constant 0.000000e+00 : f32
    %23 = vector.broadcast %cst_14 : f32 to vector<1x8xf32>
    %cst_15 = arith.constant 0.000000e+00 : f32
    %24 = vector.broadcast %cst_15 : f32 to vector<2x8xf32>
    %25 = tpu.concatenate %23, %22, %24 in 0 : vector<1x8xf32>, vector<32x8xf32>, vector<2x8xf32> -> vector<35x8xf32>
    %26 = arith.addf %21, %25 : vector<35x8xf32>
    %27 = vector.extract_strided_slice %18 {offsets = [0, 16], sizes = [32, 8], strides = [1, 1]} : vector<32x32xf32> to vector<32x8xf32>
    %cst_16 = arith.constant 0.000000e+00 : f32
    %28 = vector.broadcast %cst_16 : f32 to vector<2x8xf32>
    %cst_17 = arith.constant 0.000000e+00 : f32
    %29 = vector.broadcast %cst_17 : f32 to vector<1x8xf32>
    %30 = tpu.concatenate %28, %27, %29 in 0 : vector<2x8xf32>, vector<32x8xf32>, vector<1x8xf32> -> vector<35x8xf32>
    %31 = arith.addf %26, %30 : vector<35x8xf32>
    %32 = vector.extract_strided_slice %18 {offsets = [0, 24], sizes = [32, 8], strides = [1, 1]} : vector<32x32xf32> to vector<32x8xf32>
    %cst_18 = arith.constant 0.000000e+00 : f32
    %33 = vector.broadcast %cst_18 : f32 to vector<3x8xf32>
    %34 = tpu.concatenate %33, %32 in 0 : vector<3x8xf32>, vector<32x8xf32> -> vector<35x8xf32>
    %35 = arith.addf %31, %34 : vector<35x8xf32>
    %c0_i32 = arith.constant 0 : i32
    %36 = arith.cmpi eq, %arg1, %c0_i32 : i32
    %37 = arith.extui %36 : i1 to i32
    %c0_i32_19 = arith.constant 0 : i32
    %38 = arith.cmpi ne, %37, %c0_i32_19 : i32
    scf.if %38 {
      %cst_30 = arith.constant 0.000000e+00 : f32
      %51 = vector.broadcast %cst_30 : f32 to vector<3x8xf32>
      %c0_31 = arith.constant 0 : index
      %c0_32 = arith.constant 0 : index
      %52 = vector.load %arg9[%c0_31, %c0_32] : memref<3x8xf32, #tpu.memory_space<vmem>>, vector<3x8xf32>
      tpu.vector_store %arg9[%c0_31, %c0_32], %51 {strides = array<i32>} : memref<3x8xf32, #tpu.memory_space<vmem>>, vector<3x8xf32>,
    } else {
    }
    %c0_20 = arith.constant 0 : index
    %c0_21 = arith.constant 0 : index
    %39 = vector.load %arg9[%c0_20, %c0_21] : memref<3x8xf32, #tpu.memory_space<vmem>>, vector<3x8xf32>
    %cst_22 = arith.constant 0.000000e+00 : f32
    %40 = vector.broadcast %cst_22 : f32 to vector<29x8xf32>
    %41 = tpu.concatenate %39, %40 in 0 : vector<3x8xf32>, vector<29x8xf32> -> vector<32x8xf32>
    %42 = vector.extract_strided_slice %35 {offsets = [0, 0], sizes = [32, 8], strides = [1, 1]} : vector<35x8xf32> to vector<32x8xf32>
    %43 = arith.addf %42, %41 : vector<32x8xf32>
    %44 = vector.extract_strided_slice %35 {offsets = [32, 0], sizes = [3, 8], strides = [1, 1]} : vector<35x8xf32> to vector<3x8xf32>
    %c0_23 = arith.constant 0 : index
    %c0_24 = arith.constant 0 : index
    %45 = vector.load %arg9[%c0_23, %c0_24] : memref<3x8xf32, #tpu.memory_space<vmem>>, vector<3x8xf32>
    tpu.vector_store %arg9[%c0_23, %c0_24], %44 {strides = array<i32>} : memref<3x8xf32, #tpu.memory_space<vmem>>, vector<3x8xf32>,
    %c0_25 = arith.constant 0 : index
    %c0_26 = arith.constant 0 : index
    %46 = vector.load %arg5[%c0_25, %c0_26] : memref<32x8xf32, #tpu.memory_space<vmem>>, vector<32x8xf32>
    %47 = arith.mulf %43, %46 : vector<32x8xf32>
    %c0_27 = arith.constant 0 : index
    %c0_28 = arith.constant 0 : index
    %c0_29 = arith.constant 0 : index
    %48 = vector.load %arg8[%c0_27, %c0_28, %c0_29] : memref<1x32x8xf32, #tpu.memory_space<vmem>>, vector<1x32x8xf32>
    %49 = vector.shape_cast %48 : vector<1x32x8xf32> to vector<32x8xf32>
    %50 = vector.shape_cast %47 : vector<32x8xf32> to vector<1x32x8xf32>
    tpu.vector_store %arg8[%c0_27, %c0_28, %c0_29], %50 {strides = array<i32>} : memref<1x32x8xf32, #tpu.memory_space<vmem>>, vector<1x32x8xf32>,
    return
  }
  func.func @transform_0(%arg0: i32, %arg1: i32) -> (i32, i32, i32) {
    %c0_i32 = arith.constant 0 : i32
    %c0_i32_0 = arith.constant 0 : i32
    return %arg0, %arg1, %c0_i32 : i32, i32, i32
  }
  func.func @transform_1(%arg0: i32, %arg1: i32) -> (i32, i32, i32) {
    %c1_i32 = arith.constant 1 : i32
    %0 = arith.addi %arg1, %c1_i32 : i32
    %c0_i32 = arith.constant 0 : i32
    %c0_i32_0 = arith.constant 0 : i32
    return %arg0, %0, %c0_i32 : i32, i32, i32
  }
  func.func @transform_2(%arg0: i32, %arg1: i32) -> (i32, i32, i32) {
    %c0_i32 = arith.constant 0 : i32
    %c0_i32_0 = arith.constant 0 : i32
    return %arg0, %arg1, %c0_i32 : i32, i32, i32
  }
  func.func @transform_3(%arg0: i32, %arg1: i32) -> (i32, i32) {
    %c0_i32 = arith.constant 0 : i32
    %c0_i32_0 = arith.constant 0 : i32
    return %arg1, %c0_i32 : i32, i32
  }
  func.func @transform_4(%arg0: i32, %arg1: i32) -> (i32, i32) {
    %c0_i32 = arith.constant 0 : i32
    %c0_i32_0 = arith.constant 0 : i32
    %c0_i32_1 = arith.constant 0 : i32
    return %c0_i32, %c0_i32_0 : i32, i32
  }
  func.func @transform_5(%arg0: i32, %arg1: i32) -> (i32, i32) {
    %c0_i32 = arith.constant 0 : i32
    %c0_i32_0 = arith.constant 0 : i32
    %c0_i32_1 = arith.constant 0 : i32
    return %c0_i32, %c0_i32_0 : i32, i32
  }
  func.func @transform_6(%arg0: i32, %arg1: i32) -> (i32, i32, i32) {
    %c0_i32 = arith.constant 0 : i32
    %c0_i32_0 = arith.constant 0 : i32
    return %arg0, %arg1, %c0_i32 : i32, i32, i32
  }
}

</mosaic_0001>

<bundles_post_ra>
// kernel: tpu_custom_call.1
= control target key start
LH: loop header
LB: loop body
LE: loop exit
PB: predicated region body
PF: predicated region fallthrough
CT: control target
= control target key end

     0   :  { %s1202_s21 = smov 0   ;;  %s1204_s22 = smov 0   ;;  %s1516_s0 = inlined_call_operand.vmem [shape: f32[2,64,8], index: 0, kind: input, shape index: {}]   ;;  %s1517_s1 = inlined_call_operand.vmem [shape: f32[2,64,8], index: 1, kind: input, shape index: {}]   ;;  %s1518_s2 = inlined_call_operand.vmem [shape: f32[2,32,128], index: 2, kind: input, shape index: {}]   ;;  %s1519_s3 = inlined_call_operand.vmem [shape: f32[32,8], index: 3, kind: input, shape index: {}]   ;;  %s1520_s4 = inlined_call_operand.vmem [shape: f32[32,256], index: 4, kind: input, shape index: {}]   ;;  %s1521_s5 = inlined_call_operand.vmem [shape: f32[256,32], index: 5, kind: input, shape index: {}]   ;;  %s1522_s6 = inlined_call_operand.vmem [shape: f32[2,32,8], index: 6, kind: output, shape index: {}]  }
   0x1   :  { %s1206_s23 = smov 0  }
   0x2 LB: > { %s28_s24 = sadd.s32 1, %s1154_s22  ;;  %p984_p0 = scmp.ge.s32.totalorder %s1158_s23, 1  ;;  %s1158_s23 = sphi %s1206_s23, %s16_s23   ;;  %s1154_s22 = sphi %s1204_s22, %s1524_s22   ;;  %s1150_s21 = sphi %s1202_s21, %s1523_s21  }
   0x3   : > { %p30_p1 = scmp.ge.s32.totalorder %s28_s24, 2  ;;  %p282_p2 = scmp.lt.s32.totalorder %s1158_s23, 3 }
   0x5   : > { %s1526_s24 = smov (%p30_p1, %s28_s24), 0  ;;  %p283_p3 = pnand %p984_p0, %p282_p2 }
   0x6   : > { %p345_p4 = scmp.lt.s32.totalorder (!%p283_p3), %s1150_s21, 1  ;;  %v484_v0 = vld [vmem:[%s1520_s4 + $0x8] sm:$0xff] (!%p283_p3)  ;;  %v486_v1 = vld [vmem:[%s1520_s4 + $0x18] sm:$0xff] (!%p283_p3)  ;;  %v483_v2 = vld [vmem:[%s1520_s4] sm:$0xff] (!%p283_p3)  ;;  %v1160_v11 = vmov (!%p283_p3), 0.0   ;;  %vm819_vm0 = vcmask (!%p283_p3), 59392  }
   0x7   : > { %286 = sbr.rel (%p283_p3) target bundleno = 723 (0x2d3), region = 44  ;;  %v485_v3 = vld [vmem:[%s1520_s4 + $0x10] sm:$0xff] (!%p283_p3)  ;;  %v1049_v4 = vpack.c.bf16 (!%p283_p3), %v486_v1, %v484_v0  ;;  %v488_v6 = vld [vmem:[%s1520_s4 + $0x28] sm:$0xff] (!%p283_p3)  ;;  %v490_v7 = vld [vmem:[%s1520_s4 + $0x38] sm:$0xff] (!%p283_p3)  ;;  %568 = vmatprep.mubr.f32.mxu0 (!%p283_p3), %v1160_v11  ;;  %820 = vst.msk [vmem:[#allocation2] sm:$0x7] (!%p283_p3), %vm819_vm0, %v1160_v11 }
   0x8   : > { %v1051_v5 = vpack.c.bf16 (!%p283_p3), %v485_v3, %v483_v2  ;;  %v487_v8 = vld [vmem:[%s1520_s4 + $0x20] sm:$0xff] (!%p283_p3)  ;;  %v1053_v9 = vpack.c.bf16 (!%p283_p3), %v490_v7, %v488_v6  ;;  %v489_v10 = vld [vmem:[%s1520_s4 + $0x30] sm:$0xff] (!%p283_p3)  ;;  %vm402_vm1 = vcmask (!%p283_p3), 1046528   ;;  %vm446_vm2 = vcmask (!%p283_p3), 1044480   ;;  %s1161_s25 = smov (!%p283_p3), 8   ;;  %s1162_s26 = smov (!%p283_p3), 24  }
   0x9   : > { %1050 = vmatprep.subr.bf16.mxu0 (!%p283_p3), %v1049_v4  ;;  %v1055_v12 = vpack.c.bf16 (!%p283_p3), %v489_v10, %v487_v8  ;;  %vm424_vm3 = vcmask (!%p283_p3), 1045504   ;;  %s1163_s7 = smov (!%p283_p3), 16   ;;  %v621_v39 = vld [vmem:[%s1521_s5 + $0x80] sm:$0xff] (!%p283_p3)  ;;  %v622_v40 = vld [vmem:[%s1521_s5 + $0x88] sm:$0xff] (!%p283_p3)  ;;  %v623_v44 = vld [vmem:[%s1521_s5 + $0x90] sm:$0xff] (!%p283_p3)  ;;  %vm468_vm4 = vcmask (!%p283_p3), 64512  }
   0xa   : > { %1052 = vmatpush1.bf16.msra.mxu0 (!%p283_p3), %v1051_v5  ;;  %v605_v41 = vld [vmem:[%s1521_s5] sm:$0xff] (!%p283_p3)  ;;  %v1057_v42 = vpack.c.bf16 (!%p283_p3), %v622_v40, %v621_v39  ;;  %v606_v43 = vld [vmem:[%s1521_s5 + $0x8] sm:$0xff] (!%p283_p3)  ;;  %v624_v45 = vld [vmem:[%s1521_s5 + $0x98] sm:$0xff] (!%p283_p3)  ;;  %vm473_vm5 = vcmask (!%p283_p3), 130048   ;;  %vm478_vm6 = vcmask (!%p283_p3), 195584   ;;  %vm491_vm7 = vcmask (!%p283_p3), 261120  }
   0xb   : > { %1054 = vmatprep.subr.bf16.mxu0 (!%p283_p3), %v1053_v9  ;;  %v1310_v47 = vpack.c.bf16 (!%p283_p3), %v606_v43, %v605_v41  ;;  %v1314_v51 = vpack.c.bf16 (!%p283_p3), %v624_v45, %v623_v44  ;;  %v607_v52 = vld [vmem:[%s1521_s5 + $0x10] sm:$0xff] (!%p283_p3)  ;;  %v608_v53 = vld [vmem:[%s1521_s5 + $0x18] sm:$0xff] (!%p283_p3)  ;;  %v625_v54 = vld [vmem:[%s1521_s5 + $0xa0] sm:$0xff] (!%p283_p3)  ;;  %s1164_s18 = smov (!%p283_p3), 112   ;;  %s1165_s19 = smov (!%p283_p3), 120   ;;  %vm726_vm8 = vcmask (!%p283_p3), 1040384  }
   0xc   : > { %1089 = vmatprep.subr.bf16.mxu1 (!%p283_p3), %v1057_v42  ;;  %v626_v55 = vld [vmem:[%s1521_s5 + $0xa8] sm:$0xff] (!%p283_p3)  ;;  %v1332_v56 = vpack.c.bf16 (!%p283_p3), %v608_v53, %v607_v52  ;;  %v609_v60 = vld [vmem:[%s1521_s5 + $0x20] sm:$0xff] (!%p283_p3)  ;;  %v627_v62 = vld [vmem:[%s1521_s5 + $0xb0] sm:$0xff] (!%p283_p3)  ;;  %vm786_vm9 = vcmask (!%p283_p3), 1042432   ;;  %vm756_vm10 = vcmask (!%p283_p3), 1041408  }
   0xd   : > { %1097 = vmatpush3.bf16.msra.mxu1 (!%p283_p3), %v1310_v47  ;;  %v1336_v59 = vpack.c.bf16 (!%p283_p3), %v626_v55, %v625_v54  ;;  %v610_v61 = vld [vmem:[%s1521_s5 + $0x28] sm:$0xff] (!%p283_p3)  ;;  %v628_v63 = vld [vmem:[%s1521_s5 + $0xb8] sm:$0xff] (!%p283_p3)  ;;  %v611_v2 = vld [vmem:[%s1521_s5 + $0x30] sm:$0xff] (!%p283_p3) }
   0xe   : > { %s1528_s21 = smov (!%p345_p4, %s1150_s21), 1  ;;  %1056 = vmatpush1.bf16.msra.mxu0 %v1055_v12  ;;  %1090 = vmatprep.subr.bf16.mxu1 %v1314_v51  ;;  %v1067_v0 = vpack.c.bf16 %v610_v61, %v609_v60  ;;  %v1354_v1 = vpack.c.bf16 %v628_v63, %v627_v62  ;;  %v612_v3 = vld [vmem:[%s1521_s5 + $0x38] sm:$0xff]  ;;  %v629_v4 = vld [vmem:[%s1521_s5 + $0xc0] sm:$0xff]  ;;  %v630_v5 = vld [vmem:[%s1521_s5 + $0xc8] sm:$0xff] }
   0xf   : > { %s999_s17 = sshll.u32 %s1528_s21, 6  ;;  %1058 = vmatprep.subr.bf16.mxu0 %v1057_v42  ;;  %v1071_v6 = vpack.c.bf16 %v612_v3, %v611_v2  ;;  %v1369_v7 = vpack.c.bf16 %v630_v5, %v629_v4  ;;  %v613_v8 = vld [vmem:[%s1521_s5 + $0x40] sm:$0xff]  ;;  %v614_v9 = vld [vmem:[%s1521_s5 + $0x48] sm:$0xff]  ;;  %v631_v10 = vld [vmem:[%s1521_s5 + $0xd0] sm:$0xff]  ;;  %s1002_s15 = sshll.u32 %s1528_s21, 5 }
  0x10   : > { %s352_s20 = scalar_lea.vmem %s1516_s0, %s999_s17  ;;  %s1001_s27 = sadd.s32 32, %s999_s17  ;;  %v632_v12 = vld [vmem:[%s1521_s5 + $0xd8] sm:$0xff] }
  0x11   : > { %v1253_v13 = vld [vmem:[%s352_s20] sm:$0xff]  ;;  %v1255_v14 = vld [vmem:[%s352_s20 + $0x8] sm:$0xff]  ;;  %v1257_v15 = vld [vmem:[%s352_s20 + $0x10] sm:$0xff]  ;;  %s363_s30 = scalar_lea.vmem %s1517_s1, %s1001_s27  ;;  %1098 = vmatpush3.bf16.msra.mxu1 %v1332_v56  ;;  %s374_s17 = scalar_lea.vmem %s1518_s2, %s1002_s15 }
  0x12   : > { %v403_v16 = vrot.slane %v1253_v13, 1  ;;  %v404_v17 = vrot.slane %v1255_v14, 1  ;;  %v447_v18 = vrot.slane %v1253_v13, 3  ;;  %v448_v19 = vrot.slane %v1255_v14, 3  ;;  %v1274_v29 = vld [vmem:[%s352_s20 + $0x18] sm:$0xff]  ;;  %v396_v34 = vld [vmem:[%s363_s30] sm:$0xff]  ;;  %1091 = vmatprep.subr.bf16.mxu1 %v1336_v59 }
  0x13   : > { %v425_v20 = vrot.slane %v1253_v13, 2  ;;  %v426_v21 = vrot.slane %v1255_v14, 2  ;;  %v406_v22 = vrot.slane %v1257_v15, 1  ;;  %v428_v27 = vrot.slane %v1257_v15, 2  ;;  %v593_v53 = vld [vmem:[%s374_s17] sm:$0xff]  ;;  %v595_v63 = vld [vmem:[%s374_s17 + $0x10] sm:$0xff] }
  0x14   : > { %v405_v23 = vsel %vm402_vm1, %v403_v16, %v404_v17  ;;  %v449_v24 = vsel %vm446_vm2, %v447_v18, %v448_v19  ;;  %v450_v28 = vrot.slane %v1257_v15, 3  ;;  %v408_v32 = vrot.slane %v1274_v29, 1  ;;  %v615_v18 = vld [vmem:[%s1521_s5 + $0x50] sm:$0xff]  ;;  %v596_v4 = vld [vmem:[%s374_s17 + $0x18] sm:$0xff]  ;;  %s1166_s20 = smov 104  }
  0x15   : > { %412 = vrot.lane.b32.xlu0 %v405_v23, %s1161_s25  ;;  %456 = vrot.lane.b32.xlu1 %v449_v24, %s1162_s26  ;;  %v427_v25 = vsel %vm424_vm3, %v425_v20, %v426_v21  ;;  %v407_v26 = vsel %vm402_vm1, %v404_v17, %v406_v22  ;;  %v429_v30 = vsel %vm424_vm3, %v426_v21, %v428_v27  ;;  %v430_v33 = vrot.slane %v1274_v29, 2  ;;  %v633_v20 = vld [vmem:[%s1521_s5 + $0xe0] sm:$0xff]  ;;  %v634_v21 = vld [vmem:[%s1521_s5 + $0xe8] sm:$0xff] }
  0x16   : > { %v451_v31 = vsel %vm446_vm2, %v448_v19, %v450_v28  ;;  %v409_v35 = vsel %vm402_vm1, %v406_v22, %v408_v32  ;;  %v452_v37 = vrot.slane %v1274_v29, 3  ;;  %v410_v38 = vrot.slane %v396_v34, 1  ;;  %1099 = vmatpush3.bf16.msra.mxu1 %v1067_v0  ;;  %v616_v19 = vld [vmem:[%s1521_s5 + $0x58] sm:$0xff]  ;;  %v617_v24 = vld [vmem:[%s1521_s5 + $0x60] sm:$0xff] }
  0x17   : > { %v431_v36 = vsel %vm424_vm3, %v428_v27, %v430_v33  ;;  %v432_v46 = vrot.slane %v396_v34, 2  ;;  %v454_v50 = vrot.slane %v396_v34, 3  ;;  %1092 = vmatprep.subr.bf16.mxu1 %v1354_v1  ;;  %v1075_v16 = vpack.c.bf16 %v614_v9, %v613_v8 }
  0x18   : > { %v453_v48 = vsel %vm446_vm2, %v450_v28, %v452_v37  ;;  %v411_v49 = vsel %vm402_vm1, %v408_v32, %v410_v38  ;;  %v1077_v17 = vpack.c.bf16 %v632_v12, %v631_v10  ;;  %v1079_v22 = vpack.c.bf16 %v616_v19, %v615_v18 }
  0x19   : > { %434 = vrot.lane.b32.xlu0 %v427_v25, %s1163_s7  ;;  %414 = vrot.lane.b32.xlu1 %v407_v26, %s1161_s25  ;;  %v433_v57 = vsel %vm424_vm3, %v430_v33, %v432_v46  ;;  %v455_v58 = vsel %vm446_vm2, %v452_v37, %v454_v50  ;;  %v1081_v23 = vpack.c.bf16 %v634_v21, %v633_v20  ;;  %v618_v25 = vld [vmem:[%s1521_s5 + $0x68] sm:$0xff]  ;;  %v619_v50 = vld [vmem:[%s1521_s5 + $0x70] sm:$0xff] }
  0x1a   : > { %1100 = vmatpush3.bf16.msra.mxu1 %v1071_v6  ;;  %v1083_v26 = vpack.c.bf16 %v618_v25, %v617_v24 }
  0x1b   : > { %1093 = vmatprep.subr.bf16.mxu1 %v1369_v7 }
  0x1d   : > { %436 = vrot.lane.b32.xlu0 %v429_v30, %s1163_s7  ;;  %458 = vrot.lane.b32.xlu1 %v451_v31, %s1162_s26 }
  0x1e   : > { %1101 = vmatpush3.bf16.msra.mxu1 %v1075_v16 }
  0x1f   : > { %1094 = vmatprep.subr.bf16.mxu1 %v1077_v17 }
  0x21   : > { %416 = vrot.lane.b32.xlu0 %v409_v35, %s1161_s25  ;;  %438 = vrot.lane.b32.xlu1 %v431_v36, %s1163_s7 }
  0x22   : > { %1102 = vmatpush3.bf16.msra.mxu1 %v1079_v22 }
  0x23   : > { %1095 = vmatprep.subr.bf16.mxu1 %v1081_v23 }
  0x25   : > { %460 = vrot.lane.b32.xlu0 %v453_v48, %s1162_s26  ;;  %418 = vrot.lane.b32.xlu1 %v411_v49, %s1161_s25 }
  0x26   : > { %1103 = vmatpush3.bf16.msra.mxu1 %v1083_v26 }
  0x29   : > { %440 = vrot.lane.b32.xlu0 %v433_v57, %s1163_s7  ;;  %462 = vrot.lane.b32.xlu1 %v455_v58, %s1162_s26  ;;  %v594_v58 = vld [vmem:[%s374_s17 + $0x8] sm:$0xff]  ;;  %s1485_s7 = scalar_lea.vmem %s1522_s6, %s1002_s15 }
  0x87   : > { %v413_v27 = vpop.permute.xlu0 %412  ;;  %v457_v28 = vpop.permute.xlu1 %456 }
  0x88   : > { %v469_v30 = vsel %vm468_vm4, %v1253_v13, %v413_v27 }
  0x8b   : > { %v435_v31 = vpop.permute.xlu0 %434  ;;  %v415_v32 = vpop.permute.xlu1 %414 }
  0x8c   : > { %v474_v33 = vsel %vm473_vm5, %v469_v30, %v435_v31  ;;  %v470_v35 = vsel %vm468_vm4, %v1255_v14, %v415_v32 }
  0x8d   : > { %v479_v34 = vsel %vm478_vm6, %v474_v33, %v457_v28 }
  0x8e   : > { %993 = vmatmul.mubr.msk.f32.vlgmr.msra.gmra.mrb[0].mxu0 %vm491_vm7, %v479_v34 }
  0x8f   : > { %v437_v36 = vpop.permute.xlu0 %436  ;;  %v459_v37 = vpop.permute.xlu1 %458  ;;  %574 = vmatprep.mubr.f32.mxu0 %v1160_v11  ;;  %1060 = vmatpush3.bf16.msra.mxu0 %v1310_v47 }
  0x90   : > { %v475_v13 = vsel %vm473_vm5, %v470_v35, %v437_v36  ;;  %1062 = vmatprep.subr.bf16.mxu0 %v1314_v51  ;;  %v620_v51 = vld [vmem:[%s1521_s5 + $0x78] sm:$0xff] }
  0x91   : > { %v480_v38 = vsel %vm478_vm6, %v475_v13, %v459_v37  ;;  %v1087_v52 = vpack.c.bf16 %v620_v51, %v619_v50 }
  0x92   : > { %994 = vmatmul.mubr.msk.f32.gmra.mrb[2].mxu0 %vm491_vm7, %v480_v38 }
  0x93   : > { %v417_v39 = vpop.permute.xlu0 %416  ;;  %v439_v40 = vpop.permute.xlu1 %438  ;;  %580 = vmatprep.mubr.f32.mxu0 %v1160_v11  ;;  %1064 = vmatpush3.bf16.msra.mxu0 %v1332_v56 }
  0x94   : > { %v471_v14 = vsel %vm468_vm4, %v1257_v15, %v417_v39  ;;  %1066 = vmatprep.subr.bf16.mxu0 %v1336_v59 }
  0x95   : > { %v476_v41 = vsel %vm473_vm5, %v471_v14, %v439_v40 }
  0x97   : > { %v461_v42 = vpop.permute.xlu0 %460  ;;  %v419_v43 = vpop.permute.xlu1 %418  ;;  %1068 = vmatpush3.bf16.msra.mxu0 %v1067_v0 }
  0x98   : > { %v481_v44 = vsel %vm478_vm6, %v476_v41, %v461_v42  ;;  %1070 = vmatprep.subr.bf16.mxu0 %v1354_v1  ;;  %v472_v45 = vsel %vm468_vm4, %v1274_v29, %v419_v43  ;;  %v636_v29 = vld [vmem:[%s1521_s5 + $0xf8] sm:$0xff] }
  0x99   : > { %995 = vmatmul.mubr.msk.f32.gmra.mrb[4].mxu0 %vm491_vm7, %v481_v44 }
  0x9a   : > { %586 = vmatprep.mubr.f32.mxu0 %v1160_v11  ;;  %v635_v11 = vld [vmem:[%s1521_s5 + $0xf0] sm:$0xff] }
  0x9b   : > { %v441_v46 = vpop.permute.xlu0 %440  ;;  %v463_v15 = vpop.permute.xlu1 %462  ;;  %1072 = vmatpush3.bf16.msra.mxu0 %v1071_v6  ;;  %v1085_v49 = vpack.c.bf16 %v636_v29, %v635_v11 }
  0x9c   : > { %v477_v47 = vsel %vm473_vm5, %v472_v45, %v441_v46  ;;  %1074 = vmatprep.subr.bf16.mxu0 %v1369_v7 }
  0x9d   : > { %v482_v48 = vsel %vm478_vm6, %v477_v47, %v463_v15  ;;  %1096 = vmatprep.subr.bf16.mxu1 %v1085_v49 }
  0x9e   : > { %996 = vmatmul.mubr.msk.f32.gmra.mrb[6].mxu0 %vm491_vm7, %v482_v48  ;;  %1104 = vmatpush3.bf16.msra.mxu1 %v1087_v52  ;;  %v821_v48 = vld [vmem:[#allocation2] sm:$0x7] }
  0x9f   : > { %1076 = vmatpush3.bf16.msra.mxu0 %v1075_v16  ;;  %v822_v50 = vsel %vm786_vm9, %v821_v48, 0.0 }
  0xa0   : > { %1078 = vmatprep.subr.bf16.mxu0 %v1077_v17 }
  0xa3   : > { %1080 = vmatpush3.bf16.msra.mxu0 %v1079_v22 }
  0xa4   : > { %1082 = vmatprep.subr.bf16.mxu0 %v1081_v23 }
  0xa7   : > { %1084 = vmatpush3.bf16.msra.mxu0 %v1083_v26 }
  0xa8   : > { %1086 = vmatprep.subr.bf16.mxu0 %v1085_v49 }
  0xab   : > { %1088 = vmatpush3.bf16.msra.mxu0 %v1087_v52 }
 0x161   : > { %v570_v54 = vpop.f32.mrb[0].mxu0 }
 0x162   : > { %v597_v55 = vmul.f32 %v593_v53, %v570_v54  ;;  %v572_v56 = vpop.f32.mrb[1].mxu0  ;;  %v829_v54 = vld [vmem:[%s1519_s3] sm:$0xff] }
 0x163   : > { %v598_v57 = vmul.f32 %v593_v53, %v572_v56 }
 0x165   : > { %v576_v59 = vpop.f32.mrb[2].mxu0  ;;  %701 = vmatprep.mubr.f32.mxu0 %v598_v57 }
 0x166   : > { %v599_v60 = vmul.f32 %v594_v58, %v576_v59  ;;  %v578_v61 = vpop.f32.mrb[3].mxu0  ;;  %702 = vmatmul.mubr.f32.vlgmr.msra.gmra.mrb[8].mxu0 %v597_v55 }
 0x167   : > { %v600_v62 = vmul.f32 %v594_v58, %v578_v61  ;;  %v830_v61 = vld [vmem:[%s1519_s3 + $0x8] sm:$0xff] }
 0x169   : > { %706 = vmatprep.mubr.f32.mxu1 %v600_v62 }
 0x16a   : > { %707 = vmatmul.mubr.f32.vlgmr.msra.gmra.mrb[0].mxu1 %v599_v60 }
 0x16c   : > { %v582_v0 = vpop.f32.mrb[4].mxu0 }
 0x16d   : > { %v601_v1 = vmul.f32 %v595_v63, %v582_v0  ;;  %v584_v2 = vpop.f32.mrb[5].mxu0 }
 0x16e   : > { %v602_v3 = vmul.f32 %v595_v63, %v584_v2 }
 0x170   : > { %711 = vmatprep.mubr.f32.mxu1 %v602_v3 }
 0x171   : > { %v588_v5 = vpop.f32.mrb[6].mxu0  ;;  %712 = vmatmul.mubr.f32.gmra.mrb[2].mxu1 %v601_v1 }
 0x172   : > { %v603_v6 = vmul.f32 %v596_v4, %v588_v5  ;;  %v590_v7 = vpop.f32.mrb[7].mxu0 }
 0x173   : > { %v604_v8 = vmul.f32 %v596_v4, %v590_v7 }
 0x175   : > { %716 = vmatprep.mubr.f32.mxu1 %v604_v8 }
 0x176   : > { %717 = vmatmul.mubr.f32.gmra.mrb[4].mxu1 %v603_v6  ;;  %v831_v6 = vld [vmem:[%s1519_s3 + $0x10] sm:$0xff] }
 0x239   : > { %v1037_v9 = vpop.f32.mrb[8].mxu0 }
 0x23a   : > { %v1038_v10 = vpop.f32.mrb[9].mxu0 }
 0x23b   : > { %v1039_v12 = vadd.f32 %v1038_v10, %v1037_v9 }
 0x23d   : > { %v1040_v16 = vpop.f32.mrb[0].mxu1  ;;  %v757_v17 = vrot.slane %v1039_v12, 6  ;;  %v727_v18 = vrot.slane %v1039_v12, 7  ;;  %v787_v21 = vrot.slane %v1039_v12, 5 }
 0x23e   : > { %v1041_v19 = vpop.f32.mrb[1].mxu1 }
 0x23f   : > { %v1042_v20 = vadd.f32 %v1041_v19, %v1040_v16  ;;  %764 = vrot.lane.b32.xlu1 %v757_v17, %s1164_s18  ;;  %734 = vrot.lane.b32.xlu0 %v727_v18, %s1165_s19 }
 0x241   : > { %v728_v22 = vrot.slane %v1042_v20, 7  ;;  %v788_v23 = vrot.slane %v1042_v20, 5  ;;  %v758_v25 = vrot.slane %v1042_v20, 6 }
 0x243   : > { %794 = vrot.lane.b32.xlu1 %v787_v21, %s1166_s20  ;;  %v729_v24 = vsel %vm726_vm8, %v727_v18, %v728_v22  ;;  %v789_v30 = vsel %vm786_vm9, %v787_v21, %v788_v23  ;;  %v759_v31 = vsel %vm756_vm10, %v757_v17, %v758_v25  ;;  %v832_v21 = vld [vmem:[%s1519_s3 + $0x18] sm:$0xff] }
 0x244   : > { %v1043_v26 = vpop.f32.mrb[2].mxu1  ;;  %736 = vrot.lane.b32.xlu0 %v729_v24, %s1165_s19 }
 0x245   : > { %v1044_v27 = vpop.f32.mrb[3].mxu1 }
 0x246   : > { %v1045_v28 = vadd.f32 %v1044_v27, %v1043_v26 }
 0x247   : > { %796 = vrot.lane.b32.xlu1 %v789_v30, %s1166_s20 }
 0x248   : > { %766 = vrot.lane.b32.xlu0 %v759_v31, %s1164_s18  ;;  %v730_v32 = vrot.slane %v1045_v28, 7  ;;  %v790_v33 = vrot.slane %v1045_v28, 5  ;;  %v760_v13 = vrot.slane %v1045_v28, 6 }
 0x249   : > { %v1046_v34 = vpop.f32.mrb[4].mxu1 }
 0x24a   : > { %v1047_v35 = vpop.f32.mrb[5].mxu1  ;;  %v731_v36 = vsel %vm726_vm8, %v728_v22, %v730_v32  ;;  %v791_v37 = vsel %vm786_vm9, %v788_v23, %v790_v33  ;;  %v761_v40 = vsel %vm756_vm10, %v758_v25, %v760_v13 }
 0x24b   : > { %v1048_v38 = vadd.f32 %v1047_v35, %v1046_v34  ;;  %738 = vrot.lane.b32.xlu1 %v731_v36, %s1165_s19 }
 0x24c   : > { %798 = vrot.lane.b32.xlu0 %v791_v37, %s1166_s20 }
 0x24d   : > { %v762_v39 = vrot.slane %v1048_v38, 6  ;;  %v732_v14 = vrot.slane %v1048_v38, 7  ;;  %v792_v41 = vrot.slane %v1048_v38, 5 }
 0x24f   : > { %768 = vrot.lane.b32.xlu1 %v761_v40, %s1164_s18  ;;  %v733_v42 = vsel %vm726_vm8, %v730_v32, %v732_v14  ;;  %v793_v43 = vsel %vm786_vm9, %v790_v33, %v792_v41  ;;  %v763_v44 = vsel %vm756_vm10, %v760_v13, %v762_v39 }
 0x250   : > { %772 = vrot.lane.b32.xlu0 %v762_v39, %s1164_s18 }
 0x253   : > { %742 = vrot.lane.b32.xlu1 %v732_v14, %s1165_s19 }
 0x254   : > { %740 = vrot.lane.b32.xlu0 %v733_v42, %s1165_s19 }
 0x257   : > { %800 = vrot.lane.b32.xlu1 %v793_v43, %s1166_s20 }
 0x258   : > { %770 = vrot.lane.b32.xlu0 %v763_v44, %s1164_s18 }
 0x25c   : > { %802 = vrot.lane.b32.xlu0 %v792_v41, %s1166_s20 }
 0x2b1   : > { %v765_v45 = vpop.permute.xlu1 %764  ;;  %v735_v46 = vpop.permute.xlu0 %734 }
 0x2b2   : > { %v749_v15 = vsel %vm726_vm8, 0.0, %v735_v46  ;;  %v779_v11 = vsel %vm756_vm10, 0.0, %v765_v45 }
 0x2b3   : > { %v751_v47 = vadd.f32 %v1039_v12, %v749_v15 }
 0x2b5   : > { %v795_v29 = vpop.permute.xlu1 %794  ;;  %v781_v49 = vadd.f32 %v779_v11, %v751_v47 }
 0x2b6   : > { %v809_v51 = vsel %vm786_vm9, 0.0, %v795_v29  ;;  %v737_v52 = vpop.permute.xlu0 %736 }
 0x2b7   : > { %v810_v53 = vadd.f32 %v809_v51, %v781_v49  ;;  %v752_v56 = vadd.f32 %v1042_v20, %v737_v52 }
 0x2b9   : > { %v823_v55 = vadd.f32 %v822_v50, %v810_v53  ;;  %v797_v57 = vpop.permute.xlu1 %796 }
 0x2ba   : > { %v767_v58 = vpop.permute.xlu0 %766 }
 0x2bb   : > { %v833_v59 = vmul.f32 %v829_v54, %v823_v55  ;;  %v782_v60 = vadd.f32 %v767_v58, %v752_v56 }
 0x2bd   : > { %837 = vst.msk [vmem:[%s1485_s7] sm:$0xff] %vm468_vm4, %v833_v59  ;;  %v811_v62 = vadd.f32 %v797_v57, %v782_v60  ;;  %v739_v63 = vpop.permute.xlu1 %738 }
 0x2be   : > { %v799_v0 = vpop.permute.xlu0 %798  ;;  %v753_v2 = vadd.f32 %v1045_v28, %v739_v63 }
 0x2bf   : > { %v834_v1 = vmul.f32 %v830_v61, %v811_v62 }
 0x2c1   : > { %838 = vst.msk [vmem:[%s1485_s7 + $0x8] sm:$0xff] %vm468_vm4, %v834_v1  ;;  %v769_v3 = vpop.permute.xlu1 %768 }
 0x2c2   : > { %v783_v4 = vadd.f32 %v769_v3, %v753_v2  ;;  %v773_v5 = vpop.permute.xlu0 %772 }
 0x2c3   : > { %v780_v19 = vsel %vm756_vm10, %v773_v5, 0.0 }
 0x2c4   : > { %v812_v7 = vadd.f32 %v799_v0, %v783_v4 }
 0x2c5   : > { %v743_v9 = vpop.permute.xlu1 %742 }
 0x2c6   : > { %v835_v8 = vmul.f32 %v831_v6, %v812_v7  ;;  %v741_v10 = vpop.permute.xlu0 %740  ;;  %v750_v16 = vsel %vm726_vm8, %v743_v9, 0.0 }
 0x2c7   : > { %v754_v12 = vadd.f32 %v1048_v38, %v741_v10  ;;  %v785_v22 = vadd.f32 %v780_v19, %v750_v16 }
 0x2c8   : > { %839 = vst.msk [vmem:[%s1485_s7 + $0x10] sm:$0xff] %vm468_vm4, %v835_v8 }
 0x2c9   : > { %v801_v20 = vpop.permute.xlu1 %800 }
 0x2ca   : > { %v771_v17 = vpop.permute.xlu0 %770 }
 0x2cb   : > { %v784_v18 = vadd.f32 %v771_v17, %v754_v12 }
 0x2cd   : > { %v813_v23 = vadd.f32 %v801_v20, %v784_v18 }
 0x2ce   : > { %v803_v24 = vpop.permute.xlu0 %802 }
 0x2cf   : > { %v836_v25 = vmul.f32 %v832_v21, %v813_v23  ;;  %v814_v26 = vadd.f32 %v803_v24, %v785_v22 }
 0x2d1   : > { %840 = vst.msk [vmem:[%s1485_s7 + $0x18] sm:$0xff] %vm468_vm4, %v836_v25 }
 0x2d2   : > { %828 = vst.msk [vmem:[#allocation2] sm:$0x7] %vm819_vm0, %v814_v26 }
 0x2d3 PF: > { %s16_s23 = sadd.s32 1, %s1158_s23   ;;  %s1523_s21 = smov %s1154_s22 }
 0x2d4   : > { %p13_p5 = scmp.ge.s32.totalorder %s16_s23, 4   ;;  %s1524_s22 = smov %s1526_s24 }
 0x2d6   :  { %15 = sbr.rel (!%p13_p5) target bundleno = 2 (0x2), region = 87 }

</bundles_post_ra>
